<compile_context>
chip_gen: v7x
topology: tpu7x:2x2x1
jax: 0.10.0
libtpu: 0.0.40
codegen_flags: <defaults>
</compile_context>

<pallas_src>
import jax
import jax.numpy as jnp
from jax.experimental import pallas as pl
from jax.experimental.pallas import tpu as pltpu


def _round_up(x: int, m: int) -> int:
    return (x + m - 1) // m * m


def _pick_tile(size: int, align: int, cap: int) -> int:
    """Largest tile (multiple of `align`, <= cap, <= aligned size) whose padded
    extent wastes at most ~12.5% of the aligned size."""
    size_a = _round_up(size, align)
    limit = max(size_a * 9 // 8, size_a + align - 1)
    best = align
    t = align
    while t <= min(cap, size_a):
        if _round_up(size_a, t) <= limit:
            best = t
        t += align
    return best


def _dysoft_kernel(alpha_ref, w_ref, b_ref, x_ref, o_ref):
    # alpha_ref: SMEM (1,) f32 scalar
    # w_ref, b_ref: VMEM (TILE_R, 1) f32   (broadcast along lanes)
    # x_ref, o_ref: VMEM (TILE_R, TILE_HW)
    alpha = alpha_ref[0]
    x = alpha * x_ref[...].astype(jnp.float32)
    # softsign: x / (1 + |x|) -> multiply by EUP reciprocal (exact) instead of
    # a multi-op VALU divide.
    y = x * pl.reciprocal(1.0 + jnp.abs(x), approx=False)
    o_ref[...] = (y * w_ref[...] + b_ref[...]).astype(o_ref.dtype)


def dysoft(x_nchw, alpha, weight, bias, *, max_tile_rows=256, max_tile_cols=1024):
    """x_nchw: (N, C, H, W); alpha: (1,); weight/bias: (1, C, 1, 1)."""
    N, C, H, W = x_nchw.shape
    rows, cols = N * C, H * W

    # 2-D view: rows index (n, c), columns index spatial positions.
    x2 = x_nchw.reshape(rows, cols)

    # Lane-dense / sublane-aligned tile selection (~<=1 MiB f32 per block).
    tile_c = _pick_tile(cols, 128, max_tile_cols)
    tile_r = _pick_tile(rows, 8, max_tile_rows)
    rows_p = _round_up(rows, tile_r)
    cols_p = _round_up(cols, tile_c)

    if rows_p != rows or cols_p != cols:
        x2 = jnp.pad(x2, ((0, rows_p - rows), (0, cols_p - cols)))

    # Per-row channel parameters (tiny host-side broadcast).
    w_row = jnp.broadcast_to(weight.reshape(1, C).astype(jnp.float32),
                             (N, C)).reshape(rows, 1)
    b_row = jnp.broadcast_to(bias.reshape(1, C).astype(jnp.float32),
                             (N, C)).reshape(rows, 1)
    if rows_p != rows:
        w_row = jnp.pad(w_row, ((0, rows_p - rows), (0, 0)))
        b_row = jnp.pad(b_row, ((0, rows_p - rows), (0, 0)))

    a = alpha.reshape(1).astype(jnp.float32)

    grid = (rows_p // tile_r, cols_p // tile_c)

    # Advisory cost estimate: pure HBM streaming kernel.
    n_elems = rows_p * cols_p
    cost = pl.CostEstimate(
        flops=7 * n_elems,
        transcendentals=n_elems,                       # the reciprocal
        bytes_accessed=2 * 4 * n_elems + 2 * 4 * rows_p + 4,
    )

    out = pl.pallas_call(
        _dysoft_kernel,
        out_shape=jax.ShapeDtypeStruct((rows_p, cols_p), x_nchw.dtype),
        grid_spec=pltpu.PrefetchScalarGridSpec(
            num_scalar_prefetch=0,
            grid=grid,
            in_specs=[
                pl.BlockSpec(memory_space=pltpu.SMEM),                 # alpha
                pl.BlockSpec((tile_r, 1), lambda i, j: (i, 0)),        # weight
                pl.BlockSpec((tile_r, 1), lambda i, j: (i, 0)),        # bias
                pl.BlockSpec((tile_r, tile_c), lambda i, j: (i, j)),   # x
            ],
            out_specs=pl.BlockSpec((tile_r, tile_c), lambda i, j: (i, j)),
        ),
        compiler_params=pltpu.CompilerParams(
            dimension_semantics=("parallel", "parallel"),
            vmem_limit_bytes=32 * 1024 * 1024,
        ),
        cost_estimate=cost,
    )(a, w_row, b_row, x2)

    return out[:rows, :cols].reshape(N, C, H, W)


def dysoft_ref(x, alpha, weight, bias):
    """Pure-JAX reference mirroring the PyTorch forward."""
    y = alpha.reshape(1, 1, 1, 1) * x
    y = y / (1.0 + jnp.abs(y))
    return y * weight + bias


def _make_params(C):
    # Matches the module's __init__ (alpha=0.5, weight=ones, bias=zeros),
    # perturbed slightly so per-channel broadcasting is actually exercised.
    alpha = jnp.array([0.5], dtype=jnp.float32)
    weight = (jnp.ones((1, C, 1, 1), dtype=jnp.float32)
              + 0.1 * jnp.arange(C, dtype=jnp.float32).reshape(1, C, 1, 1))
    bias = (jnp.zeros((1, C, 1, 1), dtype=jnp.float32)
            + 0.01 * jnp.arange(C, dtype=jnp.float32).reshape(1, C, 1, 1))
    return alpha, weight, bias


if __name__ == "__main__":
    key = jax.random.PRNGKey(0)

    # Primary small case: (2, 4, 16, 16) — HW = 256 (already lane-aligned).
    N, C, H, W = 2, 4, 16, 16
    x = jax.random.normal(key, (N, C, H, W), dtype=jnp.float32)
    alpha, weight, bias = _make_params(C)

    y = dysoft(x, alpha, weight, bias)
    jax.block_until_ready(y)
    y_ref = dysoft_ref(x, alpha, weight, bias)
    assert y.shape == (N, C, H, W)
    assert jnp.allclose(y, y_ref, atol=1e-6, rtol=1e-6), "mismatch vs reference"

    # Second case exercising the padded (non-multiple-of-128 HW) path.
    N2, C2, H2, W2 = 2, 16, 20, 20   # HW = 400 -> padded to 512 lanes
    key2 = jax.random.PRNGKey(0)
    x2 = jax.random.normal(key2, (N2, C2, H2, W2), dtype=jnp.float32)
    alpha2, weight2, bias2 = _make_params(C2)

    y2 = dysoft(x2, alpha2, weight2, bias2)
    jax.block_until_ready(y2)
    y2_ref = dysoft_ref(x2, alpha2, weight2, bias2)
    assert y2.shape == (N2, C2, H2, W2)
    assert jnp.allclose(y2, y2_ref, atol=1e-6, rtol=1e-6), "padded-path mismatch"

    print("KERNEL_OK")
</pallas_src>

<mosaic_0001>
module attributes {stable_mosaic.version = 11 : i64} {
  func.func @_dysoft_kernel(%arg0: i32, %arg1: i32, %arg2: memref<1xf32, #tpu.memory_space<smem>>, %arg3: memref<8x1xf32, #tpu.memory_space<vmem>>, %arg4: memref<8x1xf32, #tpu.memory_space<vmem>>, %arg5: memref<8x256xf32, #tpu.memory_space<vmem>>, %arg6: memref<8x256xf32, #tpu.memory_space<vmem>>) attributes {dimension_semantics = [#tpu.dimension_semantics<parallel>, #tpu.dimension_semantics<parallel>], iteration_bounds = array<i64: 1, 1>, scalar_prefetch = 0 : i64, scratch_operands = 0 : i64, tpu.core_type = #tpu.core_type<tc>, window_params = [{transform_indices = @transform_0, window_bounds = array<i64: 1>}, {transform_indices = @transform_1, window_bounds = array<i64: 8, 1>}, {transform_indices = @transform_2, window_bounds = array<i64: 8, 1>}, {transform_indices = @transform_3, window_bounds = array<i64: 8, 256>}, {transform_indices = @transform_4, window_bounds = array<i64: 8, 256>}]} {
    %c0 = arith.constant 0 : index
    %0 = memref.load %arg2[%c0] : memref<1xf32, #tpu.memory_space<smem>>
    %c0_0 = arith.constant 0 : index
    %c0_1 = arith.constant 0 : index
    %1 = vector.load %arg5[%c0_0, %c0_1] : memref<8x256xf32, #tpu.memory_space<vmem>>, vector<8x256xf32>
    %2 = vector.broadcast %0 : f32 to vector<8x256xf32>
    %3 = arith.mulf %2, %1 : vector<8x256xf32>
    %4 = math.absf %3 : vector<8x256xf32>
    %cst = arith.constant 1.000000e+00 : f32
    %5 = vector.broadcast %cst : f32 to vector<8x256xf32>
    %6 = arith.addf %5, %4 : vector<8x256xf32>
    %7 = tpu.reciprocal %6 : vector<8x256xf32> -> vector<8x256xf32>
    %8 = arith.mulf %3, %7 : vector<8x256xf32>
    %c0_2 = arith.constant 0 : index
    %c0_3 = arith.constant 0 : index
    %9 = vector.load %arg3[%c0_2, %c0_3] : memref<8x1xf32, #tpu.memory_space<vmem>>, vector<8x1xf32>
    %10 = vector.broadcast %9 : vector<8x1xf32> to vector<8x256xf32>
    %11 = arith.mulf %8, %10 : vector<8x256xf32>
    %c0_4 = arith.constant 0 : index
    %c0_5 = arith.constant 0 : index
    %12 = vector.load %arg4[%c0_4, %c0_5] : memref<8x1xf32, #tpu.memory_space<vmem>>, vector<8x1xf32>
    %13 = vector.broadcast %12 : vector<8x1xf32> to vector<8x256xf32>
    %14 = arith.addf %11, %13 : vector<8x256xf32>
    %c0_6 = arith.constant 0 : index
    %c0_7 = arith.constant 0 : index
    %15 = vector.load %arg6[%c0_6, %c0_7] : memref<8x256xf32, #tpu.memory_space<vmem>>, vector<8x256xf32>
    tpu.vector_store %arg6[%c0_6, %c0_7], %14 {strides = array<i32>} : memref<8x256xf32, #tpu.memory_space<vmem>>, vector<8x256xf32>,
    return
  }
  func.func @transform_0(%arg0: i32, %arg1: i32) -> i32 {
    %c0_i32 = arith.constant 0 : i32
    %c0_i32_0 = arith.constant 0 : i32
    return %c0_i32 : i32
  }
  func.func @transform_1(%arg0: i32, %arg1: i32) -> (i32, i32) {
    %c0_i32 = arith.constant 0 : i32
    %c0_i32_0 = arith.constant 0 : i32
    return %arg0, %c0_i32 : i32, i32
  }
  func.func @transform_2(%arg0: i32, %arg1: i32) -> (i32, i32) {
    %c0_i32 = arith.constant 0 : i32
    %c0_i32_0 = arith.constant 0 : i32
    return %arg0, %c0_i32 : i32, i32
  }
  func.func @transform_3(%arg0: i32, %arg1: i32) -> (i32, i32) {
    %c0_i32 = arith.constant 0 : i32
    return %arg0, %arg1 : i32, i32
  }
  func.func @transform_4(%arg0: i32, %arg1: i32) -> (i32, i32) {
    %c0_i32 = arith.constant 0 : i32
    return %arg0, %arg1 : i32, i32
  }
}

</mosaic_0001>

<bundles_post_ra>
// kernel: tpu_custom_call.1
= control target key start
LH: loop header
LB: loop body
LE: loop exit
PB: predicated region body
PF: predicated region fallthrough
CT: control target
= control target key end

     0   :  { %v96_v1 = vmov 0   ;;  %s150_s0 = inlined_call_operand.<no memory space> [shape: f32[1], index: 0, kind: input, shape index: {}]   ;;  %s151_s1 = inlined_call_operand.vmem [shape: f32[8,1], index: 1, kind: input, shape index: {}]   ;;  %s152_s2 = inlined_call_operand.vmem [shape: f32[8,1], index: 2, kind: input, shape index: {}]   ;;  %s153_s3 = inlined_call_operand.vmem [shape: f32[8,256], index: 3, kind: input, shape index: {}]   ;;  %s154_s4 = inlined_call_operand.hbm [shape: f32[8,256], index: 4, kind: output, shape index: {}]  }
   0x1   :  { %v33_v0 = vld [vmem:[%s151_s1] sm:$0xff]  ;;  %67 = vset.pattern.permute.xlu0 %v96_v1 }
   0x2   :  { %10 = vsyncpa [#allocation4], 0  ;;  %36 = vperm.xlu0 %67, %v33_v0   ;;  %v41_v2 = vld [vmem:[%s152_s2] sm:$0xff]  ;;  %v22_v4 = vstv %s150_s0  ;;  %v21_v5 = vld [vmem:[%s153_s3 + $0x8] sm:$0xff]  ;;  %s97_s1 = smov [#allocation3]  }
   0x3   :  { %v20_v3 = vld [vmem:[%s153_s3] sm:$0xff]  ;;  %v24_v7 = vmul.f32 %v22_v4, %v21_v5  ;;  %s57_s2 = sshll.u32 %s97_s1, 4  ;;  %s58_s2 = int_to_ptr.vmem [resolvable:$true] %s57_s2 }
   0x4   :  { %v23_v6 = vmul.f32 %v22_v4, %v20_v3  ;;  %s72_s0 = scalar_lea.vmem %s58_s2, 256  ;;  %p77_p1 = scmp.lt.s32.totalorder %s58_s2, %s58_s2 }
   0x5   :  { %v26_v9 = vand.u32 2147483647, %v24_v7  ;;  %p73_p0 = scmp.ne.s32.totalorder %s58_s2, %s72_s0  ;;  %p78_p2 = scmp.lt.s32.totalorder %s72_s0, %s72_s0 }
   0x6   :  { %44 = vperm.xlu0 %67, %v41_v2   ;;  %v25_v8 = vand.u32 2147483647, %v23_v6 }
   0x7   :  { %v28_v11 = vadd.f32 1.0, %v26_v9  ;;  %p79_p3 = por %p78_p2, %p77_p1 }
   0x8   :  { %v27_v10 = vadd.f32 1.0, %v25_v8 }
   0x9   :  { %p80_p4 = pnand %p79_p3, %p73_p0 }
   0xa   :  { %68 = vrcp.f32 %v27_v10 }
   0xb   :  { %70 = vrcp.f32 %v28_v11 }
  0x14   :  { %v69_v12 = vpop.eup %68 }
  0x15   :  { %v71_v13 = vpop.eup %70  ;;  %v31_v14 = vmul.f32 %v69_v12, %v23_v6 }
  0x16   :  { %v32_v15 = vmul.f32 %v71_v13, %v24_v7 }
  0x81   :  { %v37_v16 = vpop.permute.xlu0 %36 }
  0x82   :  { %v39_v17 = vmul.f32 %v37_v16, %v31_v14  ;;  %v40_v18 = vmul.f32 %v37_v16, %v32_v15 }
  0x85   :  { %v45_v19 = vpop.permute.xlu0 %44 }
  0x86   :  { %v47_v20 = vadd.f32 %v45_v19, %v39_v17  ;;  %v48_v21 = vadd.f32 %v45_v19, %v40_v18 }
  0x88   :  { %49 = vst [vmem:[#allocation3] sm:$0xff] %v47_v20  ;;  %50 = vst [vmem:[#allocation3 + $0x8] sm:$0xff] %v48_v21 }
  0x89   :  { %83 = shalt.err (!%p80_p4)
}
  0x8a   :  { %s84_s26 = scalar_lea.hbm %s154_s4, 256 }
  0x8b   :  { %p85_p5 = scmp.ne.s32.totalorder %s154_s4, %s84_s26  ;;  %p88_p6 = scmp.lt.u32.totalorder %s84_s26, %s154_s4 }
  0x8d   :  { %p90_p7 = pnand %p88_p6, %p85_p5 }
  0x8f   :  { %93 = shalt.err (!%p90_p7)
}
  0x90   :  { %60 = dma.vmem_to_hbm [thread:$0]  %s58_s2, 256, %s154_s4, [#allocation4]  }
  0x91   :  { %94 = dma.done.wait [#allocation4], 256  }
  0x92   :  { %95 = vsyncadd [#allocation4], 4294967040 }
  0x93   :  { %64 = vsyncpa [#allocation4], 1 }

</bundles_post_ra>
